<compile_context>
chip_gen: v5e
topology: v5e:2x2
jax: 0.10.0
libtpu: 0.0.40
codegen_flags: <defaults>
</compile_context>

<pallas_src>
import jax
import jax.numpy as jnp
from jax import lax
from jax.experimental import pallas as pl
from jax.experimental.pallas import tpu as pltpu


# ----------------------------------------------------------------------------- kernel
def _build_tcn_kernel(levels, kernel_size, seq_len, batch_tile):
    """Fused TCN + final-linear kernel for a static block configuration.

    levels: tuple of dicts with keys c_in, c_out, dilation, has_down.
    Ref order: x, [per level: w1, b1, w2, b2, (wd, bd)], wfc_t, bfc, out.
    Activations are (C, Bt*T): time (packed with batch) on the lane axis.
    """
    K = kernel_size
    T = seq_len
    Bt = batch_tile
    L = Bt * T

    def kernel(*refs):
        idx = 0
        x_ref = refs[idx]; idx += 1
        per_level = []
        for lv in levels:
            n = 6 if lv["has_down"] else 4
            per_level.append(refs[idx:idx + n]); idx += n
        wfc_ref = refs[idx]          # (C_last, P)  pre-transposed in the wrapper
        bfc_ref = refs[idx + 1]      # (1, P)
        out_ref = refs[idx + 2]      # (1, Bt, P)

        # time position within each packed batch segment (lane l = j*T + t)
        tpos = lax.broadcasted_iota(jnp.int32, (1, L), 1) % T

        act = x_ref[0].astype(jnp.float32)                      # (C0, L)

        for i, lv in enumerate(levels):
            d = lv["dilation"]
            if lv["has_down"]:
                w1_ref, b1_ref, w2_ref, b2_ref, wd_ref, bd_ref = per_level[i]
            else:
                w1_ref, b1_ref, w2_ref, b2_ref = per_level[i]

            # causal delays per tap; tap K-1 has zero delay.  The 0/1 masks zero the
            # wrap-around lanes the roll introduces (incl. cross-batch-segment ones).
            shifts = [(K - 1 - k) * d for k in range(K)]
            masks = {s: (tpos >= s).astype(jnp.float32)
                     for s in set(shifts) if 0 < s < T}

            def conv(v, w_ref, b_ref):
                # bias + zero-delay tap initialize the accumulator (no zeros init)
                acc = jnp.dot(w_ref[K - 1], v,
                              preferred_element_type=jnp.float32) + b_ref[...]
                for k in range(K - 1):
                    s = shifts[k]
                    if s >= T:
                        continue          # tap only ever sees the causal zero pad
                    tap = pltpu.roll(v, s, 1) * masks[s]        # delayed, masked view
                    acc = acc + jnp.dot(w_ref[k], tap,
                                        preferred_element_type=jnp.float32)
                return jnp.maximum(acc, 0.0)

            h = conv(act, w1_ref, b1_ref)
            # TODO(synk): training-mode dropout (random mask + 1/(1-p) scale) not
            #             implemented; eval-mode identity is used.
            h = conv(h, w2_ref, b2_ref)

            # residual (1x1 conv downsample only when channel count changes)
            if lv["has_down"]:
                res = jnp.dot(wd_ref[...], act,
                              preferred_element_type=jnp.float32) + bd_ref[...]
            else:
                res = act
            act = jnp.maximum(h + res, 0.0)

        # gather the last time step of each packed batch element with a 0/1 selection
        # matmul (no strided lane gathers), then the final Linear (lane-dense in P).
        li = lax.broadcasted_iota(jnp.int32, (Bt, L), 1)
        ji = lax.broadcasted_iota(jnp.int32, (Bt, L), 0)
        sel = (li == ji * T + (T - 1)).astype(jnp.float32)              # (Bt, L)
        act_last = lax.dot_general(sel, act, (((1,), (1,)), ((), ())),
                                   preferred_element_type=jnp.float32)  # (Bt, C_last)
        y = jnp.dot(act_last, wfc_ref[...],
                    preferred_element_type=jnp.float32) + bfc_ref[...]  # (Bt, P)
        out_ref[0] = y.astype(out_ref.dtype)

    return kernel


# ----------------------------------------------------------------------------- wrapper
def weight_prior_conditioned_forward(label, params, *, input_channels, kernel_size,
                                     batch_tile=None):
    """Pallas forward of Weight_Prior_Conditioned_complexe. Returns (1, B, num_pseudo)."""
    if label.shape[1] != input_channels:                  # matches the PyTorch permute
        label = jnp.transpose(label, (0, 2, 1))           # -> (B, C_in, T)
    label = label.astype(jnp.float32)
    B, C0, T = label.shape
    K = kernel_size

    wfc = params["wfc"].astype(jnp.float32)               # (P, C_last)
    bfc = params["bfc"].astype(jnp.float32)               # (P,)
    P = wfc.shape[0]

    # Pack Bt batch elements onto the lane axis (target ~128 lanes), keeping at least
    # two grid steps when possible so both v7x TensorCores get work.
    if batch_tile is None:
        lane_target = max(1, 128 // T) if T <= 128 else 1
        batch_tile = max(1, min(B, lane_target, max(1, (B + 1) // 2)))
    G = -(-B // batch_tile)
    B_pad = G * batch_tile
    if B_pad != B:
        label = jnp.concatenate(
            [label, jnp.zeros((B_pad - B, C0, T), jnp.float32)], axis=0)
    L = batch_tile * T
    x = (label.reshape(G, batch_tile, C0, T)
              .transpose(0, 2, 1, 3)
              .reshape(G, C0, L))                          # x[g, c, j*T + t]

    levels = []
    operands = [x]
    in_specs = [pl.BlockSpec((1, C0, L), lambda g: (g, 0, 0))]
    c_prev = C0
    for i, blk in enumerate(params["blocks"]):
        c_out = blk["w1"].shape[0]
        d = 2 ** i
        has_down = blk.get("wd") is not None
        levels.append(dict(c_in=c_prev, c_out=c_out, dilation=d, has_down=has_down))

        # Weights pre-transposed in the wrapper (free XLA layout work, no in-kernel .T)
        w1 = jnp.transpose(blk["w1"].astype(jnp.float32), (2, 0, 1))   # (K, c_out, c_in)
        w2 = jnp.transpose(blk["w2"].astype(jnp.float32), (2, 0, 1))   # (K, c_out, c_out)
        b1 = blk["b1"].astype(jnp.float32).reshape(c_out, 1)
        b2 = blk["b2"].astype(jnp.float32).reshape(c_out, 1)
        operands += [w1, b1, w2, b2]
        in_specs += [
            pl.BlockSpec((K, c_out, c_prev), lambda g: (0, 0, 0)),
            pl.BlockSpec((c_out, 1), lambda g: (0, 0)),
            pl.BlockSpec((K, c_out, c_out), lambda g: (0, 0, 0)),
            pl.BlockSpec((c_out, 1), lambda g: (0, 0)),
        ]
        if has_down:
            wd = blk["wd"].astype(jnp.float32)                          # (c_out, c_in)
            bd = blk["bd"].astype(jnp.float32).reshape(c_out, 1)
            operands += [wd, bd]
            in_specs += [
                pl.BlockSpec((c_out, c_prev), lambda g: (0, 0)),
                pl.BlockSpec((c_out, 1), lambda g: (0, 0)),
            ]
        c_prev = c_out

    operands += [wfc.T, bfc.reshape(1, P)]                 # lane-dense final weight/bias
    in_specs += [
        pl.BlockSpec((c_prev, P), lambda g: (0, 0)),
        pl.BlockSpec((1, P), lambda g: (0, 0)),
    ]

    kernel = _build_tcn_kernel(tuple(levels), K, T, batch_tile)

    out = pl.pallas_call(
        kernel,
        out_shape=jax.ShapeDtypeStruct((G, batch_tile, P), jnp.float32),
        grid=(G,),
        in_specs=in_specs,
        out_specs=pl.BlockSpec((1, batch_tile, P), lambda g: (g, 0, 0)),
        compiler_params=pltpu.CompilerParams(dimension_semantics=("parallel",)),
    )(*operands)

    out = out.reshape(B_pad, P)[:B]
    return out[None]                                       # (1, B, num_pseudo_inputs)


# ----------------------------------------------------------------------------- params / reference
def init_params(key, input_channels, num_channels, kernel_size, num_pseudo_inputs):
    """Deterministic synthetic effective parameters (weight_norm folded in)."""
    def u(k, shape, bound):
        return jax.random.uniform(k, shape, jnp.float32, -bound, bound)

    keys = jax.random.split(key, 6 * len(num_channels) + 2)
    params = {"blocks": []}
    c_prev, ki = input_channels, 0
    for c in num_channels:
        b1 = (c_prev * kernel_size) ** -0.5
        b2 = (c * kernel_size) ** -0.5
        blk = {
            "w1": u(keys[ki + 0], (c, c_prev, kernel_size), b1),
            "b1": u(keys[ki + 1], (c,), b1),
            "w2": u(keys[ki + 2], (c, c, kernel_size), b2),
            "b2": u(keys[ki + 3], (c,), b2),
        }
        if c != c_prev:
            bd = c_prev ** -0.5
            blk["wd"] = u(keys[ki + 4], (c, c_prev), bd)
            blk["bd"] = u(keys[ki + 5], (c,), bd)
        else:
            blk["wd"] = None
            blk["bd"] = None
        params["blocks"].append(blk)
        c_prev, ki = c, ki + 6
    bf = c_prev ** -0.5
    params["wfc"] = u(keys[ki], (num_pseudo_inputs, c_prev), bf)
    params["bfc"] = u(keys[ki + 1], (num_pseudo_inputs,), bf)
    return params


def _ref_dilated_causal_conv(x, w, b, dilation):
    K = w.shape[-1]
    pad = (K - 1) * dilation
    T = x.shape[-1]
    xp = jnp.pad(x, ((0, 0), (0, 0), (pad, 0)))
    y = b[None, :, None]
    for k in range(K):
        y = y + jnp.einsum("oc,bct->bot", w[:, :, k],
                           xp[:, :, k * dilation:k * dilation + T],
                           precision=jax.lax.Precision.HIGHEST)
    return y


def reference_forward(label, params, *, input_channels, kernel_size):
    """Pure-JAX reference of the PyTorch forward (eval mode)."""
    if label.shape[1] != input_channels:
        label = jnp.transpose(label, (0, 2, 1))
    x = label.astype(jnp.float32)
    for i, blk in enumerate(params["blocks"]):
        d = 2 ** i
        h = jax.nn.relu(_ref_dilated_causal_conv(x, blk["w1"], blk["b1"], d))
        h = jax.nn.relu(_ref_dilated_causal_conv(h, blk["w2"], blk["b2"], d))
        if blk["wd"] is not None:
            res = jnp.einsum("oc,bct->bot", blk["wd"], x,
                             precision=jax.lax.Precision.HIGHEST) + blk["bd"][None, :, None]
        else:
            res = x
        x = jax.nn.relu(h + res)
    h_last = x[:, :, -1]
    y = jnp.einsum("bc,pc->bp", h_last, params["wfc"],
                   precision=jax.lax.Precision.HIGHEST) + params["bfc"][None, :]
    return y[None]


# ----------------------------------------------------------------------------- main
if __name__ == "__main__":
    batch = 16
    seq_len = 16
    input_channels = 4
    num_channels = [8, 8, 16]        # level 1 has no downsample (8 -> 8) by construction
    kernel_size = 3
    num_pseudo_inputs = 10
    dropout = 0.2                    # unused (eval mode)

    key = jax.random.PRNGKey(0)
    pkey, xkey = jax.random.split(key)
    params = init_params(pkey, input_channels, num_channels, kernel_size, num_pseudo_inputs)

    # label supplied time-major (B, T, C_in) to exercise the permute branch of forward()
    label = jax.random.normal(xkey, (batch, seq_len, input_channels), jnp.float32)

    out = weight_prior_conditioned_forward(label, params,
                                           input_channels=input_channels,
                                           kernel_size=kernel_size)
    out = jax.block_until_ready(out)

    ref = reference_forward(label, params, input_channels=input_channels,
                            kernel_size=kernel_size)
    assert out.shape == (1, batch, num_pseudo_inputs)
    assert jnp.allclose(out, ref, atol=2e-3, rtol=2e-3), "mismatch vs reference"

    print("KERNEL_OK")
</pallas_src>

<mosaic_0001>
module attributes {stable_mosaic.version = 11 : i64} {
  func.func @kernel(%arg0: i32, %arg1: memref<1x4x128xf32, #tpu.memory_space<vmem>>, %arg2: memref<3x8x4xf32, #tpu.memory_space<vmem>>, %arg3: memref<8x1xf32, #tpu.memory_space<vmem>>, %arg4: memref<3x8x8xf32, #tpu.memory_space<vmem>>, %arg5: memref<8x1xf32, #tpu.memory_space<vmem>>, %arg6: memref<8x4xf32, #tpu.memory_space<vmem>>, %arg7: memref<8x1xf32, #tpu.memory_space<vmem>>, %arg8: memref<3x8x8xf32, #tpu.memory_space<vmem>>, %arg9: memref<8x1xf32, #tpu.memory_space<vmem>>, %arg10: memref<3x8x8xf32, #tpu.memory_space<vmem>>, %arg11: memref<8x1xf32, #tpu.memory_space<vmem>>, %arg12: memref<3x16x8xf32, #tpu.memory_space<vmem>>, %arg13: memref<16x1xf32, #tpu.memory_space<vmem>>, %arg14: memref<3x16x16xf32, #tpu.memory_space<vmem>>, %arg15: memref<16x1xf32, #tpu.memory_space<vmem>>, %arg16: memref<16x8xf32, #tpu.memory_space<vmem>>, %arg17: memref<16x1xf32, #tpu.memory_space<vmem>>, %arg18: memref<16x10xf32, #tpu.memory_space<vmem>>, %arg19: memref<1x10xf32, #tpu.memory_space<vmem>>, %arg20: memref<1x8x10xf32, #tpu.memory_space<vmem>>) attributes {dimension_semantics = [#tpu.dimension_semantics<parallel>], iteration_bounds = array<i64: 2>, scalar_prefetch = 0 : i64, scratch_operands = 0 : i64, tpu.core_type = #tpu.core_type<tc>, window_params = [{transform_indices = @transform_0, window_bounds = array<i64: 1, 4, 128>}, {pipeline_mode = #tpu.pipeline_mode<synchronous>, transform_indices = @transform_1, window_bounds = array<i64: 3, 8, 4>}, {pipeline_mode = #tpu.pipeline_mode<synchronous>, transform_indices = @transform_2, window_bounds = array<i64: 8, 1>}, {pipeline_mode = #tpu.pipeline_mode<synchronous>, transform_indices = @transform_3, window_bounds = array<i64: 3, 8, 8>}, {pipeline_mode = #tpu.pipeline_mode<synchronous>, transform_indices = @transform_4, window_bounds = array<i64: 8, 1>}, {pipeline_mode = #tpu.pipeline_mode<synchronous>, transform_indices = @transform_5, window_bounds = array<i64: 8, 4>}, {pipeline_mode = #tpu.pipeline_mode<synchronous>, transform_indices = @transform_6, window_bounds = array<i64: 8, 1>}, {pipeline_mode = #tpu.pipeline_mode<synchronous>, transform_indices = @transform_7, window_bounds = array<i64: 3, 8, 8>}, {pipeline_mode = #tpu.pipeline_mode<synchronous>, transform_indices = @transform_8, window_bounds = array<i64: 8, 1>}, {pipeline_mode = #tpu.pipeline_mode<synchronous>, transform_indices = @transform_9, window_bounds = array<i64: 3, 8, 8>}, {pipeline_mode = #tpu.pipeline_mode<synchronous>, transform_indices = @transform_10, window_bounds = array<i64: 8, 1>}, {pipeline_mode = #tpu.pipeline_mode<synchronous>, transform_indices = @transform_11, window_bounds = array<i64: 3, 16, 8>}, {pipeline_mode = #tpu.pipeline_mode<synchronous>, transform_indices = @transform_12, window_bounds = array<i64: 16, 1>}, {pipeline_mode = #tpu.pipeline_mode<synchronous>, transform_indices = @transform_13, window_bounds = array<i64: 3, 16, 16>}, {pipeline_mode = #tpu.pipeline_mode<synchronous>, transform_indices = @transform_14, window_bounds = array<i64: 16, 1>}, {pipeline_mode = #tpu.pipeline_mode<synchronous>, transform_indices = @transform_15, window_bounds = array<i64: 16, 8>}, {pipeline_mode = #tpu.pipeline_mode<synchronous>, transform_indices = @transform_16, window_bounds = array<i64: 16, 1>}, {pipeline_mode = #tpu.pipeline_mode<synchronous>, transform_indices = @transform_17, window_bounds = array<i64: 16, 10>}, {pipeline_mode = #tpu.pipeline_mode<synchronous>, transform_indices = @transform_18, window_bounds = array<i64: 1, 10>}, {transform_indices = @transform_19, window_bounds = array<i64: 1, 8, 10>}]} {
    %0 = tpu.iota {dimensions = array<i32: 1>} : vector<1x128xi32>
    %c16_i32 = arith.constant 16 : i32
    %c0_i32 = arith.constant 0 : i32
    %1 = arith.cmpi eq, %c16_i32, %c0_i32 : i32
    %c1_i32 = arith.constant 1 : i32
    %2 = arith.select %1, %c1_i32, %c16_i32 : i32
    %3 = vector.broadcast %2 : i32 to vector<1x128xi32>
    %4 = arith.remsi %0, %3 : vector<1x128xi32>
    %c0_i32_0 = arith.constant 0 : i32
    %5 = vector.broadcast %c0_i32_0 : i32 to vector<1x128xi32>
    %6 = arith.cmpi ne, %4, %5 : vector<1x128xi32>
    %c0_i32_1 = arith.constant 0 : i32
    %7 = vector.broadcast %c0_i32_1 : i32 to vector<1x128xi32>
    %8 = arith.cmpi slt, %4, %7 : vector<1x128xi32>
    %c0_i32_2 = arith.constant 0 : i32
    %9 = arith.cmpi slt, %2, %c0_i32_2 : i32
    %10 = vector.broadcast %9 : i1 to vector<1x128xi1>
    %11 = vector.broadcast %10 : vector<1x128xi1> to vector<1x128xi1>
    %12 = arith.xori %8, %11 : vector<1x128xi1>
    %13 = arith.andi %12, %6 : vector<1x128xi1>
    %14 = vector.broadcast %2 : i32 to vector<1x128xi32>
    %15 = arith.addi %4, %14 : vector<1x128xi32>
    %16 = arith.select %13, %15, %4 : vector<1x128xi1>, vector<1x128xi32>
    %c0 = arith.constant 0 : index
    %c0_3 = arith.constant 0 : index
    %c0_4 = arith.constant 0 : index
    %17 = vector.load %arg1[%c0, %c0_3, %c0_4] : memref<1x4x128xf32, #tpu.memory_space<vmem>>, vector<1x4x128xf32>
    %18 = vector.shape_cast %17 : vector<1x4x128xf32> to vector<4x128xf32>
    %c1_i32_5 = arith.constant 1 : i32
    %19 = vector.broadcast %c1_i32_5 : i32 to vector<1x128xi32>
    %20 = arith.cmpi sge, %16, %19 : vector<1x128xi32>
    %21 = arith.extui %20 : vector<1x128xi1> to vector<1x128xi32>
    %22 = arith.sitofp %21 : vector<1x128xi32> to vector<1x128xf32>
    %c2_i32 = arith.constant 2 : i32
    %23 = vector.broadcast %c2_i32 : i32 to vector<1x128xi32>
    %24 = arith.cmpi sge, %16, %23 : vector<1x128xi32>
    %25 = arith.extui %24 : vector<1x128xi1> to vector<1x128xi32>
    %26 = arith.sitofp %25 : vector<1x128xi32> to vector<1x128xf32>
    %c2 = arith.constant 2 : index
    %c0_6 = arith.constant 0 : index
    %c0_7 = arith.constant 0 : index
    %27 = vector.load %arg2[%c2, %c0_6, %c0_7] : memref<3x8x4xf32, #tpu.memory_space<vmem>>, vector<1x8x4xf32>
    %28 = vector.shape_cast %27 : vector<1x8x4xf32> to vector<8x4xf32>
    %cst = arith.constant dense<0.000000e+00> : vector<8x128xf32>
    %29 = tpu.matmul %28, %18, %cst {dimension_numbers = #tpu.dot_dimension_numbers<[1], [0], [0], [1], [0, 0, 1, 1], [], []>} : vector<8x4xf32>, vector<4x128xf32>, vector<8x128xf32> -> vector<8x128xf32>
    %c0_8 = arith.constant 0 : index
    %c0_9 = arith.constant 0 : index
    %30 = vector.load %arg3[%c0_8, %c0_9] : memref<8x1xf32, #tpu.memory_space<vmem>>, vector<8x1xf32>
    %31 = vector.broadcast %30 : vector<8x1xf32> to vector<8x128xf32>
    %32 = arith.addf %29, %31 : vector<8x128xf32>
    %c2_i32_10 = arith.constant 2 : i32
    %33 = tpu.dynamic_rotate %18 by %c2_i32_10 dim 1 : vector<4x128xf32>, i32 -> vector<4x128xf32>
    %34 = vector.broadcast %26 : vector<1x128xf32> to vector<4x128xf32>
    %35 = arith.mulf %33, %34 : vector<4x128xf32>
    %c0_11 = arith.constant 0 : index
    %c0_12 = arith.constant 0 : index
    %c0_13 = arith.constant 0 : index
    %36 = vector.load %arg2[%c0_11, %c0_12, %c0_13] : memref<3x8x4xf32, #tpu.memory_space<vmem>>, vector<1x8x4xf32>
    %37 = vector.shape_cast %36 : vector<1x8x4xf32> to vector<8x4xf32>
    %cst_14 = arith.constant dense<0.000000e+00> : vector<8x128xf32>
    %38 = tpu.matmul %37, %35, %cst_14 {dimension_numbers = #tpu.dot_dimension_numbers<[1], [0], [0], [1], [0, 0, 1, 1], [], []>} : vector<8x4xf32>, vector<4x128xf32>, vector<8x128xf32> -> vector<8x128xf32>
    %39 = arith.addf %32, %38 : vector<8x128xf32>
    %c1_i32_15 = arith.constant 1 : i32
    %40 = tpu.dynamic_rotate %18 by %c1_i32_15 dim 1 : vector<4x128xf32>, i32 -> vector<4x128xf32>
    %41 = vector.broadcast %22 : vector<1x128xf32> to vector<4x128xf32>
    %42 = arith.mulf %40, %41 : vector<4x128xf32>
    %c1 = arith.constant 1 : index
    %c0_16 = arith.constant 0 : index
    %c0_17 = arith.constant 0 : index
    %43 = vector.load %arg2[%c1, %c0_16, %c0_17] : memref<3x8x4xf32, #tpu.memory_space<vmem>>, vector<1x8x4xf32>
    %44 = vector.shape_cast %43 : vector<1x8x4xf32> to vector<8x4xf32>
    %cst_18 = arith.constant dense<0.000000e+00> : vector<8x128xf32>
    %45 = tpu.matmul %44, %42, %cst_18 {dimension_numbers = #tpu.dot_dimension_numbers<[1], [0], [0], [1], [0, 0, 1, 1], [], []>} : vector<8x4xf32>, vector<4x128xf32>, vector<8x128xf32> -> vector<8x128xf32>
    %46 = arith.addf %39, %45 : vector<8x128xf32>
    %cst_19 = arith.constant 0.000000e+00 : f32
    %47 = vector.broadcast %cst_19 : f32 to vector<8x128xf32>
    %48 = arith.maximumf %46, %47 : vector<8x128xf32>
    %c2_20 = arith.constant 2 : index
    %c0_21 = arith.constant 0 : index
    %c0_22 = arith.constant 0 : index
    %49 = vector.load %arg4[%c2_20, %c0_21, %c0_22] : memref<3x8x8xf32, #tpu.memory_space<vmem>>, vector<1x8x8xf32>
    %50 = vector.shape_cast %49 : vector<1x8x8xf32> to vector<8x8xf32>
    %cst_23 = arith.constant dense<0.000000e+00> : vector<8x128xf32>
    %51 = tpu.matmul %50, %48, %cst_23 {dimension_numbers = #tpu.dot_dimension_numbers<[1], [0], [0], [1], [0, 0, 1, 1], [], []>} : vector<8x8xf32>, vector<8x128xf32>, vector<8x128xf32> -> vector<8x128xf32>
    %c0_24 = arith.constant 0 : index
    %c0_25 = arith.constant 0 : index
    %52 = vector.load %arg5[%c0_24, %c0_25] : memref<8x1xf32, #tpu.memory_space<vmem>>, vector<8x1xf32>
    %53 = vector.broadcast %52 : vector<8x1xf32> to vector<8x128xf32>
    %54 = arith.addf %51, %53 : vector<8x128xf32>
    %c2_i32_26 = arith.constant 2 : i32
    %55 = tpu.dynamic_rotate %48 by %c2_i32_26 dim 1 : vector<8x128xf32>, i32 -> vector<8x128xf32>
    %56 = vector.broadcast %26 : vector<1x128xf32> to vector<8x128xf32>
    %57 = arith.mulf %55, %56 : vector<8x128xf32>
    %c0_27 = arith.constant 0 : index
    %c0_28 = arith.constant 0 : index
    %c0_29 = arith.constant 0 : index
    %58 = vector.load %arg4[%c0_27, %c0_28, %c0_29] : memref<3x8x8xf32, #tpu.memory_space<vmem>>, vector<1x8x8xf32>
    %59 = vector.shape_cast %58 : vector<1x8x8xf32> to vector<8x8xf32>
    %cst_30 = arith.constant dense<0.000000e+00> : vector<8x128xf32>
    %60 = tpu.matmul %59, %57, %cst_30 {dimension_numbers = #tpu.dot_dimension_numbers<[1], [0], [0], [1], [0, 0, 1, 1], [], []>} : vector<8x8xf32>, vector<8x128xf32>, vector<8x128xf32> -> vector<8x128xf32>
    %61 = arith.addf %54, %60 : vector<8x128xf32>
    %c1_i32_31 = arith.constant 1 : i32
    %62 = tpu.dynamic_rotate %48 by %c1_i32_31 dim 1 : vector<8x128xf32>, i32 -> vector<8x128xf32>
    %63 = vector.broadcast %22 : vector<1x128xf32> to vector<8x128xf32>
    %64 = arith.mulf %62, %63 : vector<8x128xf32>
    %c1_32 = arith.constant 1 : index
    %c0_33 = arith.constant 0 : index
    %c0_34 = arith.constant 0 : index
    %65 = vector.load %arg4[%c1_32, %c0_33, %c0_34] : memref<3x8x8xf32, #tpu.memory_space<vmem>>, vector<1x8x8xf32>
    %66 = vector.shape_cast %65 : vector<1x8x8xf32> to vector<8x8xf32>
    %cst_35 = arith.constant dense<0.000000e+00> : vector<8x128xf32>
    %67 = tpu.matmul %66, %64, %cst_35 {dimension_numbers = #tpu.dot_dimension_numbers<[1], [0], [0], [1], [0, 0, 1, 1], [], []>} : vector<8x8xf32>, vector<8x128xf32>, vector<8x128xf32> -> vector<8x128xf32>
    %68 = arith.addf %61, %67 : vector<8x128xf32>
    %cst_36 = arith.constant 0.000000e+00 : f32
    %69 = vector.broadcast %cst_36 : f32 to vector<8x128xf32>
    %70 = arith.maximumf %68, %69 : vector<8x128xf32>
    %c0_37 = arith.constant 0 : index
    %c0_38 = arith.constant 0 : index
    %71 = vector.load %arg6[%c0_37, %c0_38] : memref<8x4xf32, #tpu.memory_space<vmem>>, vector<8x4xf32>
    %cst_39 = arith.constant dense<0.000000e+00> : vector<8x128xf32>
    %72 = tpu.matmul %71, %18, %cst_39 {dimension_numbers = #tpu.dot_dimension_numbers<[1], [0], [0], [1], [0, 0, 1, 1], [], []>} : vector<8x4xf32>, vector<4x128xf32>, vector<8x128xf32> -> vector<8x128xf32>
    %c0_40 = arith.constant 0 : index
    %c0_41 = arith.constant 0 : index
    %73 = vector.load %arg7[%c0_40, %c0_41] : memref<8x1xf32, #tpu.memory_space<vmem>>, vector<8x1xf32>
    %74 = vector.broadcast %73 : vector<8x1xf32> to vector<8x128xf32>
    %75 = arith.addf %72, %74 : vector<8x128xf32>
    %76 = arith.addf %70, %75 : vector<8x128xf32>
    %cst_42 = arith.constant 0.000000e+00 : f32
    %77 = vector.broadcast %cst_42 : f32 to vector<8x128xf32>
    %78 = arith.maximumf %76, %77 : vector<8x128xf32>
    %c2_i32_43 = arith.constant 2 : i32
    %79 = vector.broadcast %c2_i32_43 : i32 to vector<1x128xi32>
    %80 = arith.cmpi sge, %16, %79 : vector<1x128xi32>
    %81 = arith.extui %80 : vector<1x128xi1> to vector<1x128xi32>
    %82 = arith.sitofp %81 : vector<1x128xi32> to vector<1x128xf32>
    %c4_i32 = arith.constant 4 : i32
    %83 = vector.broadcast %c4_i32 : i32 to vector<1x128xi32>
    %84 = arith.cmpi sge, %16, %83 : vector<1x128xi32>
    %85 = arith.extui %84 : vector<1x128xi1> to vector<1x128xi32>
    %86 = arith.sitofp %85 : vector<1x128xi32> to vector<1x128xf32>
    %c2_44 = arith.constant 2 : index
    %c0_45 = arith.constant 0 : index
    %c0_46 = arith.constant 0 : index
    %87 = vector.load %arg8[%c2_44, %c0_45, %c0_46] : memref<3x8x8xf32, #tpu.memory_space<vmem>>, vector<1x8x8xf32>
    %88 = vector.shape_cast %87 : vector<1x8x8xf32> to vector<8x8xf32>
    %cst_47 = arith.constant dense<0.000000e+00> : vector<8x128xf32>
    %89 = tpu.matmul %88, %78, %cst_47 {dimension_numbers = #tpu.dot_dimension_numbers<[1], [0], [0], [1], [0, 0, 1, 1], [], []>} : vector<8x8xf32>, vector<8x128xf32>, vector<8x128xf32> -> vector<8x128xf32>
    %c0_48 = arith.constant 0 : index
    %c0_49 = arith.constant 0 : index
    %90 = vector.load %arg9[%c0_48, %c0_49] : memref<8x1xf32, #tpu.memory_space<vmem>>, vector<8x1xf32>
    %91 = vector.broadcast %90 : vector<8x1xf32> to vector<8x128xf32>
    %92 = arith.addf %89, %91 : vector<8x128xf32>
    %c4_i32_50 = arith.constant 4 : i32
    %93 = tpu.dynamic_rotate %78 by %c4_i32_50 dim 1 : vector<8x128xf32>, i32 -> vector<8x128xf32>
    %94 = vector.broadcast %86 : vector<1x128xf32> to vector<8x128xf32>
    %95 = arith.mulf %93, %94 : vector<8x128xf32>
    %c0_51 = arith.constant 0 : index
    %c0_52 = arith.constant 0 : index
    %c0_53 = arith.constant 0 : index
    %96 = vector.load %arg8[%c0_51, %c0_52, %c0_53] : memref<3x8x8xf32, #tpu.memory_space<vmem>>, vector<1x8x8xf32>
    %97 = vector.shape_cast %96 : vector<1x8x8xf32> to vector<8x8xf32>
    %cst_54 = arith.constant dense<0.000000e+00> : vector<8x128xf32>
    %98 = tpu.matmul %97, %95, %cst_54 {dimension_numbers = #tpu.dot_dimension_numbers<[1], [0], [0], [1], [0, 0, 1, 1], [], []>} : vector<8x8xf32>, vector<8x128xf32>, vector<8x128xf32> -> vector<8x128xf32>
    %99 = arith.addf %92, %98 : vector<8x128xf32>
    %c2_i32_55 = arith.constant 2 : i32
    %100 = tpu.dynamic_rotate %78 by %c2_i32_55 dim 1 : vector<8x128xf32>, i32 -> vector<8x128xf32>
    %101 = vector.broadcast %82 : vector<1x128xf32> to vector<8x128xf32>
    %102 = arith.mulf %100, %101 : vector<8x128xf32>
    %c1_56 = arith.constant 1 : index
    %c0_57 = arith.constant 0 : index
    %c0_58 = arith.constant 0 : index
    %103 = vector.load %arg8[%c1_56, %c0_57, %c0_58] : memref<3x8x8xf32, #tpu.memory_space<vmem>>, vector<1x8x8xf32>
    %104 = vector.shape_cast %103 : vector<1x8x8xf32> to vector<8x8xf32>
    %cst_59 = arith.constant dense<0.000000e+00> : vector<8x128xf32>
    %105 = tpu.matmul %104, %102, %cst_59 {dimension_numbers = #tpu.dot_dimension_numbers<[1], [0], [0], [1], [0, 0, 1, 1], [], []>} : vector<8x8xf32>, vector<8x128xf32>, vector<8x128xf32> -> vector<8x128xf32>
    %106 = arith.addf %99, %105 : vector<8x128xf32>
    %cst_60 = arith.constant 0.000000e+00 : f32
    %107 = vector.broadcast %cst_60 : f32 to vector<8x128xf32>
    %108 = arith.maximumf %106, %107 : vector<8x128xf32>
    %c2_61 = arith.constant 2 : index
    %c0_62 = arith.constant 0 : index
    %c0_63 = arith.constant 0 : index
    %109 = vector.load %arg10[%c2_61, %c0_62, %c0_63] : memref<3x8x8xf32, #tpu.memory_space<vmem>>, vector<1x8x8xf32>
    %110 = vector.shape_cast %109 : vector<1x8x8xf32> to vector<8x8xf32>
    %cst_64 = arith.constant dense<0.000000e+00> : vector<8x128xf32>
    %111 = tpu.matmul %110, %108, %cst_64 {dimension_numbers = #tpu.dot_dimension_numbers<[1], [0], [0], [1], [0, 0, 1, 1], [], []>} : vector<8x8xf32>, vector<8x128xf32>, vector<8x128xf32> -> vector<8x128xf32>
    %c0_65 = arith.constant 0 : index
    %c0_66 = arith.constant 0 : index
    %112 = vector.load %arg11[%c0_65, %c0_66] : memref<8x1xf32, #tpu.memory_space<vmem>>, vector<8x1xf32>
    %113 = vector.broadcast %112 : vector<8x1xf32> to vector<8x128xf32>
    %114 = arith.addf %111, %113 : vector<8x128xf32>
    %c4_i32_67 = arith.constant 4 : i32
    %115 = tpu.dynamic_rotate %108 by %c4_i32_67 dim 1 : vector<8x128xf32>, i32 -> vector<8x128xf32>
    %116 = vector.broadcast %86 : vector<1x128xf32> to vector<8x128xf32>
    %117 = arith.mulf %115, %116 : vector<8x128xf32>
    %c0_68 = arith.constant 0 : index
    %c0_69 = arith.constant 0 : index
    %c0_70 = arith.constant 0 : index
    %118 = vector.load %arg10[%c0_68, %c0_69, %c0_70] : memref<3x8x8xf32, #tpu.memory_space<vmem>>, vector<1x8x8xf32>
    %119 = vector.shape_cast %118 : vector<1x8x8xf32> to vector<8x8xf32>
    %cst_71 = arith.constant dense<0.000000e+00> : vector<8x128xf32>
    %120 = tpu.matmul %119, %117, %cst_71 {dimension_numbers = #tpu.dot_dimension_numbers<[1], [0], [0], [1], [0, 0, 1, 1], [], []>} : vector<8x8xf32>, vector<8x128xf32>, vector<8x128xf32> -> vector<8x128xf32>
    %121 = arith.addf %114, %120 : vector<8x128xf32>
    %c2_i32_72 = arith.constant 2 : i32
    %122 = tpu.dynamic_rotate %108 by %c2_i32_72 dim 1 : vector<8x128xf32>, i32 -> vector<8x128xf32>
    %123 = vector.broadcast %82 : vector<1x128xf32> to vector<8x128xf32>
    %124 = arith.mulf %122, %123 : vector<8x128xf32>
    %c1_73 = arith.constant 1 : index
    %c0_74 = arith.constant 0 : index
    %c0_75 = arith.constant 0 : index
    %125 = vector.load %arg10[%c1_73, %c0_74, %c0_75] : memref<3x8x8xf32, #tpu.memory_space<vmem>>, vector<1x8x8xf32>
    %126 = vector.shape_cast %125 : vector<1x8x8xf32> to vector<8x8xf32>
    %cst_76 = arith.constant dense<0.000000e+00> : vector<8x128xf32>
    %127 = tpu.matmul %126, %124, %cst_76 {dimension_numbers = #tpu.dot_dimension_numbers<[1], [0], [0], [1], [0, 0, 1, 1], [], []>} : vector<8x8xf32>, vector<8x128xf32>, vector<8x128xf32> -> vector<8x128xf32>
    %128 = arith.addf %121, %127 : vector<8x128xf32>
    %cst_77 = arith.constant 0.000000e+00 : f32
    %129 = vector.broadcast %cst_77 : f32 to vector<8x128xf32>
    %130 = arith.maximumf %128, %129 : vector<8x128xf32>
    %131 = arith.addf %130, %78 : vector<8x128xf32>
    %cst_78 = arith.constant 0.000000e+00 : f32
    %132 = vector.broadcast %cst_78 : f32 to vector<8x128xf32>
    %133 = arith.maximumf %131, %132 : vector<8x128xf32>
    %c8_i32 = arith.constant 8 : i32
    %134 = vector.broadcast %c8_i32 : i32 to vector<1x128xi32>
    %135 = arith.cmpi sge, %16, %134 : vector<1x128xi32>
    %136 = arith.extui %135 : vector<1x128xi1> to vector<1x128xi32>
    %137 = arith.sitofp %136 : vector<1x128xi32> to vector<1x128xf32>
    %c4_i32_79 = arith.constant 4 : i32
    %138 = vector.broadcast %c4_i32_79 : i32 to vector<1x128xi32>
    %139 = arith.cmpi sge, %16, %138 : vector<1x128xi32>
    %140 = arith.extui %139 : vector<1x128xi1> to vector<1x128xi32>
    %141 = arith.sitofp %140 : vector<1x128xi32> to vector<1x128xf32>
    %c2_80 = arith.constant 2 : index
    %c0_81 = arith.constant 0 : index
    %c0_82 = arith.constant 0 : index
    %142 = vector.load %arg12[%c2_80, %c0_81, %c0_82] : memref<3x16x8xf32, #tpu.memory_space<vmem>>, vector<1x16x8xf32>
    %143 = vector.shape_cast %142 : vector<1x16x8xf32> to vector<16x8xf32>
    %cst_83 = arith.constant dense<0.000000e+00> : vector<16x128xf32>
    %144 = tpu.matmul %143, %133, %cst_83 {dimension_numbers = #tpu.dot_dimension_numbers<[1], [0], [0], [1], [0, 0, 1, 1], [], []>} : vector<16x8xf32>, vector<8x128xf32>, vector<16x128xf32> -> vector<16x128xf32>
    %c0_84 = arith.constant 0 : index
    %c0_85 = arith.constant 0 : index
    %145 = vector.load %arg13[%c0_84, %c0_85] : memref<16x1xf32, #tpu.memory_space<vmem>>, vector<16x1xf32>
    %146 = vector.broadcast %145 : vector<16x1xf32> to vector<16x128xf32>
    %147 = arith.addf %144, %146 : vector<16x128xf32>
    %c8_i32_86 = arith.constant 8 : i32
    %148 = tpu.dynamic_rotate %133 by %c8_i32_86 dim 1 : vector<8x128xf32>, i32 -> vector<8x128xf32>
    %149 = vector.broadcast %137 : vector<1x128xf32> to vector<8x128xf32>
    %150 = arith.mulf %148, %149 : vector<8x128xf32>
    %c0_87 = arith.constant 0 : index
    %c0_88 = arith.constant 0 : index
    %c0_89 = arith.constant 0 : index
    %151 = vector.load %arg12[%c0_87, %c0_88, %c0_89] : memref<3x16x8xf32, #tpu.memory_space<vmem>>, vector<1x16x8xf32>
    %152 = vector.shape_cast %151 : vector<1x16x8xf32> to vector<16x8xf32>
    %cst_90 = arith.constant dense<0.000000e+00> : vector<16x128xf32>
    %153 = tpu.matmul %152, %150, %cst_90 {dimension_numbers = #tpu.dot_dimension_numbers<[1], [0], [0], [1], [0, 0, 1, 1], [], []>} : vector<16x8xf32>, vector<8x128xf32>, vector<16x128xf32> -> vector<16x128xf32>
    %154 = arith.addf %147, %153 : vector<16x128xf32>
    %c4_i32_91 = arith.constant 4 : i32
    %155 = tpu.dynamic_rotate %133 by %c4_i32_91 dim 1 : vector<8x128xf32>, i32 -> vector<8x128xf32>
    %156 = vector.broadcast %141 : vector<1x128xf32> to vector<8x128xf32>
    %157 = arith.mulf %155, %156 : vector<8x128xf32>
    %c1_92 = arith.constant 1 : index
    %c0_93 = arith.constant 0 : index
    %c0_94 = arith.constant 0 : index
    %158 = vector.load %arg12[%c1_92, %c0_93, %c0_94] : memref<3x16x8xf32, #tpu.memory_space<vmem>>, vector<1x16x8xf32>
    %159 = vector.shape_cast %158 : vector<1x16x8xf32> to vector<16x8xf32>
    %cst_95 = arith.constant dense<0.000000e+00> : vector<16x128xf32>
    %160 = tpu.matmul %159, %157, %cst_95 {dimension_numbers = #tpu.dot_dimension_numbers<[1], [0], [0], [1], [0, 0, 1, 1], [], []>} : vector<16x8xf32>, vector<8x128xf32>, vector<16x128xf32> -> vector<16x128xf32>
    %161 = arith.addf %154, %160 : vector<16x128xf32>
    %cst_96 = arith.constant 0.000000e+00 : f32
    %162 = vector.broadcast %cst_96 : f32 to vector<16x128xf32>
    %163 = arith.maximumf %161, %162 : vector<16x128xf32>
    %c2_97 = arith.constant 2 : index
    %c0_98 = arith.constant 0 : index
    %c0_99 = arith.constant 0 : index
    %164 = vector.load %arg14[%c2_97, %c0_98, %c0_99] : memref<3x16x16xf32, #tpu.memory_space<vmem>>, vector<1x16x16xf32>
    %165 = vector.shape_cast %164 : vector<1x16x16xf32> to vector<16x16xf32>
    %cst_100 = arith.constant dense<0.000000e+00> : vector<16x128xf32>
    %166 = tpu.matmul %165, %163, %cst_100 {dimension_numbers = #tpu.dot_dimension_numbers<[1], [0], [0], [1], [0, 0, 1, 1], [], []>} : vector<16x16xf32>, vector<16x128xf32>, vector<16x128xf32> -> vector<16x128xf32>
    %c0_101 = arith.constant 0 : index
    %c0_102 = arith.constant 0 : index
    %167 = vector.load %arg15[%c0_101, %c0_102] : memref<16x1xf32, #tpu.memory_space<vmem>>, vector<16x1xf32>
    %168 = vector.broadcast %167 : vector<16x1xf32> to vector<16x128xf32>
    %169 = arith.addf %166, %168 : vector<16x128xf32>
    %c8_i32_103 = arith.constant 8 : i32
    %170 = tpu.dynamic_rotate %163 by %c8_i32_103 dim 1 : vector<16x128xf32>, i32 -> vector<16x128xf32>
    %171 = vector.broadcast %137 : vector<1x128xf32> to vector<16x128xf32>
    %172 = arith.mulf %170, %171 : vector<16x128xf32>
    %c0_104 = arith.constant 0 : index
    %c0_105 = arith.constant 0 : index
    %c0_106 = arith.constant 0 : index
    %173 = vector.load %arg14[%c0_104, %c0_105, %c0_106] : memref<3x16x16xf32, #tpu.memory_space<vmem>>, vector<1x16x16xf32>
    %174 = vector.shape_cast %173 : vector<1x16x16xf32> to vector<16x16xf32>
    %cst_107 = arith.constant dense<0.000000e+00> : vector<16x128xf32>
    %175 = tpu.matmul %174, %172, %cst_107 {dimension_numbers = #tpu.dot_dimension_numbers<[1], [0], [0], [1], [0, 0, 1, 1], [], []>} : vector<16x16xf32>, vector<16x128xf32>, vector<16x128xf32> -> vector<16x128xf32>
    %176 = arith.addf %169, %175 : vector<16x128xf32>
    %c4_i32_108 = arith.constant 4 : i32
    %177 = tpu.dynamic_rotate %163 by %c4_i32_108 dim 1 : vector<16x128xf32>, i32 -> vector<16x128xf32>
    %178 = vector.broadcast %141 : vector<1x128xf32> to vector<16x128xf32>
    %179 = arith.mulf %177, %178 : vector<16x128xf32>
    %c1_109 = arith.constant 1 : index
    %c0_110 = arith.constant 0 : index
    %c0_111 = arith.constant 0 : index
    %180 = vector.load %arg14[%c1_109, %c0_110, %c0_111] : memref<3x16x16xf32, #tpu.memory_space<vmem>>, vector<1x16x16xf32>
    %181 = vector.shape_cast %180 : vector<1x16x16xf32> to vector<16x16xf32>
    %cst_112 = arith.constant dense<0.000000e+00> : vector<16x128xf32>
    %182 = tpu.matmul %181, %179, %cst_112 {dimension_numbers = #tpu.dot_dimension_numbers<[1], [0], [0], [1], [0, 0, 1, 1], [], []>} : vector<16x16xf32>, vector<16x128xf32>, vector<16x128xf32> -> vector<16x128xf32>
    %183 = arith.addf %176, %182 : vector<16x128xf32>
    %cst_113 = arith.constant 0.000000e+00 : f32
    %184 = vector.broadcast %cst_113 : f32 to vector<16x128xf32>
    %185 = arith.maximumf %183, %184 : vector<16x128xf32>
    %c0_114 = arith.constant 0 : index
    %c0_115 = arith.constant 0 : index
    %186 = vector.load %arg16[%c0_114, %c0_115] : memref<16x8xf32, #tpu.memory_space<vmem>>, vector<16x8xf32>
    %cst_116 = arith.constant dense<0.000000e+00> : vector<16x128xf32>
    %187 = tpu.matmul %186, %133, %cst_116 {dimension_numbers = #tpu.dot_dimension_numbers<[1], [0], [0], [1], [0, 0, 1, 1], [], []>} : vector<16x8xf32>, vector<8x128xf32>, vector<16x128xf32> -> vector<16x128xf32>
    %c0_117 = arith.constant 0 : index
    %c0_118 = arith.constant 0 : index
    %188 = vector.load %arg17[%c0_117, %c0_118] : memref<16x1xf32, #tpu.memory_space<vmem>>, vector<16x1xf32>
    %189 = vector.broadcast %188 : vector<16x1xf32> to vector<16x128xf32>
    %190 = arith.addf %187, %189 : vector<16x128xf32>
    %191 = arith.addf %185, %190 : vector<16x128xf32>
    %cst_119 = arith.constant 0.000000e+00 : f32
    %192 = vector.broadcast %cst_119 : f32 to vector<16x128xf32>
    %193 = arith.maximumf %191, %192 : vector<16x128xf32>
    %194 = tpu.iota {dimensions = array<i32: 1>} : vector<8x128xi32>
    %195 = tpu.iota {dimensions = array<i32: 0>} : vector<8x128xi32>
    %c16_i32_120 = arith.constant 16 : i32
    %196 = vector.broadcast %c16_i32_120 : i32 to vector<8x128xi32>
    %197 = arith.muli %195, %196 : vector<8x128xi32>
    %c15_i32 = arith.constant 15 : i32
    %198 = vector.broadcast %c15_i32 : i32 to vector<8x128xi32>
    %199 = arith.addi %197, %198 : vector<8x128xi32>
    %200 = arith.cmpi eq, %194, %199 : vector<8x128xi32>
    %201 = arith.extui %200 : vector<8x128xi1> to vector<8x128xi32>
    %202 = arith.sitofp %201 : vector<8x128xi32> to vector<8x128xf32>
    %cst_121 = arith.constant dense<0.000000e+00> : vector<8x16xf32>
    %203 = tpu.matmul %202, %193, %cst_121 {dimension_numbers = #tpu.dot_dimension_numbers<[1], [1], [0], [0], [0, 0, 1, 0], [], []>} : vector<8x128xf32>, vector<16x128xf32>, vector<8x16xf32> -> vector<8x16xf32>
    %c0_122 = arith.constant 0 : index
    %c0_123 = arith.constant 0 : index
    %204 = vector.load %arg18[%c0_122, %c0_123] : memref<16x10xf32, #tpu.memory_space<vmem>>, vector<16x10xf32>
    %cst_124 = arith.constant dense<0.000000e+00> : vector<8x10xf32>
    %205 = tpu.matmul %203, %204, %cst_124 {dimension_numbers = #tpu.dot_dimension_numbers<[1], [0], [0], [1], [0, 0, 1, 1], [], []>} : vector<8x16xf32>, vector<16x10xf32>, vector<8x10xf32> -> vector<8x10xf32>
    %c0_125 = arith.constant 0 : index
    %c0_126 = arith.constant 0 : index
    %206 = vector.load %arg19[%c0_125, %c0_126] : memref<1x10xf32, #tpu.memory_space<vmem>>, vector<1x10xf32>
    %207 = vector.broadcast %206 : vector<1x10xf32> to vector<8x10xf32>
    %208 = arith.addf %205, %207 : vector<8x10xf32>
    %c0_127 = arith.constant 0 : index
    %c0_128 = arith.constant 0 : index
    %c0_129 = arith.constant 0 : index
    %209 = vector.load %arg20[%c0_127, %c0_128, %c0_129] : memref<1x8x10xf32, #tpu.memory_space<vmem>>, vector<1x8x10xf32>
    %210 = vector.shape_cast %209 : vector<1x8x10xf32> to vector<8x10xf32>
    %211 = vector.shape_cast %208 : vector<8x10xf32> to vector<1x8x10xf32>
    tpu.vector_store %arg20[%c0_127, %c0_128, %c0_129], %211 {strides = array<i32>} : memref<1x8x10xf32, #tpu.memory_space<vmem>>, vector<1x8x10xf32>,
    return
  }
  func.func @transform_0(%arg0: i32) -> (i32, i32, i32) {
    %c0_i32 = arith.constant 0 : i32
    %c0_i32_0 = arith.constant 0 : i32
    %c0_i32_1 = arith.constant 0 : i32
    return %arg0, %c0_i32, %c0_i32_0 : i32, i32, i32
  }
  func.func @transform_1(%arg0: i32) -> (i32, i32, i32) {
    %c0_i32 = arith.constant 0 : i32
    %c0_i32_0 = arith.constant 0 : i32
    %c0_i32_1 = arith.constant 0 : i32
    %c0_i32_2 = arith.constant 0 : i32
    return %c0_i32, %c0_i32_0, %c0_i32_1 : i32, i32, i32
  }
  func.func @transform_2(%arg0: i32) -> (i32, i32) {
    %c0_i32 = arith.constant 0 : i32
    %c0_i32_0 = arith.constant 0 : i32
    %c0_i32_1 = arith.constant 0 : i32
    return %c0_i32, %c0_i32_0 : i32, i32
  }
  func.func @transform_3(%arg0: i32) -> (i32, i32, i32) {
    %c0_i32 = arith.constant 0 : i32
    %c0_i32_0 = arith.constant 0 : i32
    %c0_i32_1 = arith.constant 0 : i32
    %c0_i32_2 = arith.constant 0 : i32
    return %c0_i32, %c0_i32_0, %c0_i32_1 : i32, i32, i32
  }
  func.func @transform_4(%arg0: i32) -> (i32, i32) {
    %c0_i32 = arith.constant 0 : i32
    %c0_i32_0 = arith.constant 0 : i32
    %c0_i32_1 = arith.constant 0 : i32
    return %c0_i32, %c0_i32_0 : i32, i32
  }
  func.func @transform_5(%arg0: i32) -> (i32, i32) {
    %c0_i32 = arith.constant 0 : i32
    %c0_i32_0 = arith.constant 0 : i32
    %c0_i32_1 = arith.constant 0 : i32
    return %c0_i32, %c0_i32_0 : i32, i32
  }
  func.func @transform_6(%arg0: i32) -> (i32, i32) {
    %c0_i32 = arith.constant 0 : i32
    %c0_i32_0 = arith.constant 0 : i32
    %c0_i32_1 = arith.constant 0 : i32
    return %c0_i32, %c0_i32_0 : i32, i32
  }
  func.func @transform_7(%arg0: i32) -> (i32, i32, i32) {
    %c0_i32 = arith.constant 0 : i32
    %c0_i32_0 = arith.constant 0 : i32
    %c0_i32_1 = arith.constant 0 : i32
    %c0_i32_2 = arith.constant 0 : i32
    return %c0_i32, %c0_i32_0, %c0_i32_1 : i32, i32, i32
  }
  func.func @transform_8(%arg0: i32) -> (i32, i32) {
    %c0_i32 = arith.constant 0 : i32
    %c0_i32_0 = arith.constant 0 : i32
    %c0_i32_1 = arith.constant 0 : i32
    return %c0_i32, %c0_i32_0 : i32, i32
  }
  func.func @transform_9(%arg0: i32) -> (i32, i32, i32) {
    %c0_i32 = arith.constant 0 : i32
    %c0_i32_0 = arith.constant 0 : i32
    %c0_i32_1 = arith.constant 0 : i32
    %c0_i32_2 = arith.constant 0 : i32
    return %c0_i32, %c0_i32_0, %c0_i32_1 : i32, i32, i32
  }
  func.func @transform_10(%arg0: i32) -> (i32, i32) {
    %c0_i32 = arith.constant 0 : i32
    %c0_i32_0 = arith.constant 0 : i32
    %c0_i32_1 = arith.constant 0 : i32
    return %c0_i32, %c0_i32_0 : i32, i32
  }
  func.func @transform_11(%arg0: i32) -> (i32, i32, i32) {
    %c0_i32 = arith.constant 0 : i32
    %c0_i32_0 = arith.constant 0 : i32
    %c0_i32_1 = arith.constant 0 : i32
    %c0_i32_2 = arith.constant 0 : i32
    return %c0_i32, %c0_i32_0, %c0_i32_1 : i32, i32, i32
  }
  func.func @transform_12(%arg0: i32) -> (i32, i32) {
    %c0_i32 = arith.constant 0 : i32
    %c0_i32_0 = arith.constant 0 : i32
    %c0_i32_1 = arith.constant 0 : i32
    return %c0_i32, %c0_i32_0 : i32, i32
  }
  func.func @transform_13(%arg0: i32) -> (i32, i32, i32) {
    %c0_i32 = arith.constant 0 : i32
    %c0_i32_0 = arith.constant 0 : i32
    %c0_i32_1 = arith.constant 0 : i32
    %c0_i32_2 = arith.constant 0 : i32
    return %c0_i32, %c0_i32_0, %c0_i32_1 : i32, i32, i32
  }
  func.func @transform_14(%arg0: i32) -> (i32, i32) {
    %c0_i32 = arith.constant 0 : i32
    %c0_i32_0 = arith.constant 0 : i32
    %c0_i32_1 = arith.constant 0 : i32
    return %c0_i32, %c0_i32_0 : i32, i32
  }
  func.func @transform_15(%arg0: i32) -> (i32, i32) {
    %c0_i32 = arith.constant 0 : i32
    %c0_i32_0 = arith.constant 0 : i32
    %c0_i32_1 = arith.constant 0 : i32
    return %c0_i32, %c0_i32_0 : i32, i32
  }
  func.func @transform_16(%arg0: i32) -> (i32, i32) {
    %c0_i32 = arith.constant 0 : i32
    %c0_i32_0 = arith.constant 0 : i32
    %c0_i32_1 = arith.constant 0 : i32
    return %c0_i32, %c0_i32_0 : i32, i32
  }
  func.func @transform_17(%arg0: i32) -> (i32, i32) {
    %c0_i32 = arith.constant 0 : i32
    %c0_i32_0 = arith.constant 0 : i32
    %c0_i32_1 = arith.constant 0 : i32
    return %c0_i32, %c0_i32_0 : i32, i32
  }
  func.func @transform_18(%arg0: i32) -> (i32, i32) {
    %c0_i32 = arith.constant 0 : i32
    %c0_i32_0 = arith.constant 0 : i32
    %c0_i32_1 = arith.constant 0 : i32
    return %c0_i32, %c0_i32_0 : i32, i32
  }
  func.func @transform_19(%arg0: i32) -> (i32, i32, i32) {
    %c0_i32 = arith.constant 0 : i32
    %c0_i32_0 = arith.constant 0 : i32
    %c0_i32_1 = arith.constant 0 : i32
    return %arg0, %c0_i32, %c0_i32_0 : i32, i32, i32
  }
}

</mosaic_0001>

<bundles_post_ra>
// kernel: tpu_custom_call.1
= control target key start
LH: loop header
LB: loop body
LE: loop exit
PB: predicated region body
PF: predicated region fallthrough
CT: control target
= control target key end

     0   :  { %s2025_s0 = inlined_call_operand.vmem [shape: f32[2,4,128], index: 0, kind: input, shape index: {}]   ;;  %s2026_s1 = inlined_call_operand.vmem [shape: f32[3,8,4], index: 1, kind: input, shape index: {}]   ;;  %s2027_s2 = inlined_call_operand.vmem [shape: f32[8,1], index: 2, kind: input, shape index: {}]   ;;  %s2028_s3 = inlined_call_operand.vmem [shape: f32[3,8,8], index: 3, kind: input, shape index: {}]   ;;  %s2029_s4 = inlined_call_operand.vmem [shape: f32[8,1], index: 4, kind: input, shape index: {}]   ;;  %s2030_s5 = inlined_call_operand.vmem [shape: f32[8,4], index: 5, kind: input, shape index: {}]   ;;  %s2031_s6 = inlined_call_operand.vmem [shape: f32[8,1], index: 6, kind: input, shape index: {}]   ;;  %s2032_s7 = inlined_call_operand.vmem [shape: f32[3,8,8], index: 7, kind: input, shape index: {}]   ;;  %s2033_s8 = inlined_call_operand.vmem [shape: f32[8,1], index: 8, kind: input, shape index: {}]   ;;  %s2034_s9 = inlined_call_operand.vmem [shape: f32[3,8,8], index: 9, kind: input, shape index: {}]   ;;  %s2035_s10 = inlined_call_operand.vmem [shape: f32[8,1], index: 10, kind: input, shape index: {}]   ;;  %s2036_s11 = inlined_call_operand.vmem [shape: f32[3,16,8], index: 11, kind: input, shape index: {}]   ;;  %s2037_s12 = inlined_call_operand.vmem [shape: f32[16,1], index: 12, kind: input, shape index: {}]   ;;  %s2038_s13 = inlined_call_operand.vmem [shape: f32[3,16,16], index: 13, kind: input, shape index: {}]   ;;  %s2039_s14 = inlined_call_operand.vmem [shape: f32[16,1], index: 14, kind: input, shape index: {}]   ;;  %s2040_s15 = inlined_call_operand.vmem [shape: f32[16,8], index: 15, kind: input, shape index: {}]   ;;  %s2041_s16 = inlined_call_operand.vmem [shape: f32[16,1], index: 16, kind: input, shape index: {}]   ;;  %s2042_s17 = inlined_call_operand.vmem [shape: f32[16,10], index: 17, kind: input, shape index: {}]   ;;  %s2043_s18 = inlined_call_operand.vmem [shape: f32[1,10], index: 18, kind: input, shape index: {}]   ;;  %s2044_s19 = inlined_call_operand.hbm [shape: f32[2,8,10], index: 19, kind: output, shape index: {}]  }
   0x1   :  { %2055 = sst [smem:[#allocation11_spill]] %s2025_s0 }
   0x2   :  { %2056 = sst [smem:[#allocation12_spill]] %s2026_s1 }
   0x3   :  { %2057 = sst [smem:[#allocation13_spill]] %s2027_s2 }
   0x4   :  { %2058 = sst [smem:[#allocation14_spill]] %s2028_s3 }
   0x5   :  { %2059 = sst [smem:[#allocation15_spill]] %s2029_s4 }
   0x6   :  { %2060 = sst [smem:[#allocation16_spill]] %s2030_s5 }
   0x7   :  { %2061 = sst [smem:[#allocation17_spill]] %s2031_s6 }
   0x8   :  { %24 = vsyncpa [#allocation3], 0 }
   0x9   :  { %26 = vsyncpa [#allocation3 + $0x1], 0  ;;  %s1737_s0 = smov 0   ;;  %s1739_s30 = smov 0  }
   0xa   :  { %s1741_s20 = smov 0   ;;  %s1743_s21 = smov 0  }
   0xb LB: > { %2062 = sst [smem:[#allocation5_spill]] %s1616_s0  ;;  %s1758_s1 = sadd.s32 4294967295, %s1628_s21   ;;  %s1628_s21 = sphi %s1743_s21, %s2081_s21   ;;  %s1624_s20 = sphi %s1741_s20, %s2083_s20   ;;  %s1620_s30 = sphi %s1739_s30, %s2085_s30   ;;  %s1616_s0 = sphi %s1737_s0, %s2084_s0  }
   0xc   : > { %2063 = sst [smem:[#allocation6_spill]] %s1624_s20  ;;  %s1452_s22 = sadd.s32 4294967294, %s1628_s21  }
   0xd   : > { %s1762_s2 = sadd.s32 1, %s1628_s21   ;;  %s443_s23 = sadd.s32 1, %s1624_s20 }
   0xe   : > { %2064 = sst [smem:[#allocation7_spill]] %s1762_s2  ;;  %s440_s24 = ssub.s32 %s1628_s21, %s1762_s2 }
   0xf   : > { %p453_p0 = scmp.ne.s32.totalorder %s1624_s20, %s1620_s30  ;;  %p441_p1 = scmp.eq.s32.totalorder %s440_s24, 0 }
  0x10   : > { %p454_p2 = scmp.eq.s32.totalorder %s1758_s1, 1  ;;  %p459_p3 = scmp.ne.s32.totalorder %s1620_s30, %s1616_s0 }
  0x11   : > { %p460_p4 = scmp.eq.s32.totalorder %s1452_s22, 1  ;;  %p1455_p7 = scmp.ge.s32.totalorder %s1628_s21, 1 }
  0x12   : > { %s1773_s25 = scalar_select %p441_p1, %s1624_s20, %s443_s23  }
  0x13   : > { %p1775_p5 = por %p454_p2, %p453_p0  ;;  %p1779_p6 = por %p460_p4, %p459_p3 }
  0x14   : > { %2065 = sst [smem:[#allocation8_spill]] %s1773_s25  ;;  %p539_p8 = scmp.lt.s32.totalorder %s1628_s21, 3 }
  0x15   : > { %s2066_s3 = scalar_select %p1775_p5, 1, 0 }
  0x16   : > { %s2068_s26 = scalar_select %p1779_p6, 1, 0 }
  0x17   : > { %2067 = sst [smem:[#allocation9_spill]] %s2066_s3  ;;  %p540_p9 = pnand %p1455_p7, %p539_p8 }
  0x18   : > { %2069 = sst [smem:[#allocation10_spill]] %s2068_s26  ;;  %p594_p10 = scmp.lt.s32.totalorder (!%p540_p9), %s1758_s1, 1 }
  0x19   : > { %543 = sbr.rel (%p540_p9) target bundleno = 1845 (0x735), region = 96  ;;  %s2070_s23 = sld [smem:[#allocation11_spill]] (!%p540_p9) }
  0x1a   : > { %s1630_s25 = smov (!%p540_p9), 1   ;;  %s1631_s20 = smov (!%p540_p9), 2  }
  0x1b   : > { %s2071_s0 = sld [smem:[#allocation12_spill]] (!%p540_p9)  ;;  %s1634_s2 = smov (!%p540_p9), 4  }
  0x1c   : > { %s2075_s5 = sld [smem:[#allocation16_spill]] (!%p540_p9)  ;;  %s1635_s26 = smov (!%p540_p9), 8  }
  0x1d   : > { %s2076_s6 = sld [smem:[#allocation17_spill]] (!%p540_p9) }
  0x1e   : > { %s595_s27 = scalar_select %p594_p10, %s1758_s1, 1  ;;  %vm631_vm0 = vcmask 1043456   ;;  %vm627_vm1 = vcmask 31744   ;;  %v1632_v3 = vmov 0   ;;  %v598_v4 = vlaneseq  ;;  %v1476_v47 = vld [vmem:[%s2032_s7 + $0x10] sm:$0xff]  ;;  %v846_v48 = vld [vmem:[%s2033_s8] sm:$0xff] }
  0x1f   : > { %1562 = vset.pattern.permute.xlu1 %v1632_v3  ;;  %1564 = vset.pattern.permute.xlu0 %v1632_v3  ;;  %v1633_v7 = vmov 0.0   ;;  %vm727_vm4 = vcmask 64512   ;;  %s2077_s4 = sld [smem:[#allocation15_spill]]  ;;  %v935_v49 = vld [vmem:[%s2035_s10] sm:$0xff]  ;;  %v1031_v50 = vld [vmem:[%s2037_s12 + $0x8] sm:$0xff]  ;;  %vm1161_vm7 = vcmask 130048  }
  0x20   : > { %s1457_s28 = sshll.u32 %s595_s27, 2  ;;  %1563 = vset.pattern.permute.xlu2 %v1632_v3  ;;  %v1801_v5 = vand.u32 127, %v598_v4  ;;  %s2074_s27 = sld [smem:[#allocation14_spill]]  ;;  %v1479_v53 = vld [vmem:[%s2032_s7 + $0x8] sm:$0xff]  ;;  %v878_v57 = vld [vmem:[%s2032_s7] sm:$0xff]  ;;  %vm1375_vm9 = vcmask 80896  }
  0x21   : > { %s597_s24 = scalar_lea.vmem %s2070_s23, %s1457_s28  ;;  %s2072_s3 = smov %s2071_s0  ;;  %v1460_v1 = vld [vmem:[%s2071_s0 + $0x10] sm:$0xff] }
  0x22   : > { %v612_v0 = vld [vmem:[%s597_s24] sm:$0xf]  ;;  %s2073_s28 = sld [smem:[#allocation13_spill]]  ;;  %v1804_v6 = vand.u32 15, %v1801_v5  ;;  %v1465_v11 = vld [vmem:[%s2072_s3 + $0x8] sm:$0xff]  ;;  %s1513_s0 = sshll.u32 %s1758_s1, 3 }
  0x23   : > { %686 = vrot.lane.b32.xlu0 %v612_v0, %s1630_s25  ;;  %1461 = vmatpush.msk.msra.mxu0 %vm631_vm0, %v612_v0  ;;  %v658_v15 = vld [vmem:[%s2072_s3] sm:$0xff]  ;;  %s1388_s22 = scalar_lea.hbm %s2044_s19, %s1513_s0 }
  0x24   : > { %1462 = vmatmul.msk.f32.vlgmr.msra.gmra.mxu0 %vm627_vm1, %v1460_v1  ;;  %vm613_vm2 = vcmp.ge.s32.totalorder %v1804_v6, 1  ;;  %vm616_vm3 = vcmp.ge.s32.totalorder %v1804_v6, 2  ;;  %v809_v25 = vld [vmem:[%s2075_s5] sm:$0xff]  ;;  %vm841_vm5 = vcmp.ge.s32.totalorder %v1804_v6, 4  ;;  %vm1024_vm6 = vcmp.ge.s32.totalorder %v1804_v6, 8 }
  0x25   : > { %v1458_v8 = vsel %vm613_vm2, 1.0, %v1633_v7  ;;  %v1816_v12 = vsel %vm616_vm3, 1.0, %v1633_v7  ;;  %v810_v26 = vld [vmem:[%s2076_s6] sm:$0xff]  ;;  %v1871_v54 = vsel %vm841_vm5, 1.0, %v1633_v7 }
  0x26   : > { %v1468_v24 = vld [vmem:[%s2074_s27 + $0x10] sm:$0xff]  ;;  %v721_v27 = vld [vmem:[%s2077_s4] sm:$0xff]  ;;  %v1471_v30 = vld [vmem:[%s2074_s27 + $0x8] sm:$0xff]  ;;  %s1392_s4 = sshll.u32 %s1388_s22, 4  ;;  %s1393_s4 = int_to_ptr.hbm [resolvable:$true] %s1392_s4 }
  0x27   : > { %v754_v33 = vld [vmem:[%s2074_s27] sm:$0xff]  ;;  %s1580_s1 = sshra.s32 %s1393_s4, 4  ;;  %s1581_s1 = int_to_ptr.hbm [resolvable:$true] %s1580_s1 }
  0x28   : > { %v621_v2 = vld [vmem:[%s2073_s28] sm:$0xff]  ;;  %s591_s28 = sand.u32 1, %s1620_s30   ;;  %s1582_s6 = scalar_lea.hbm %s1581_s1, 8 }
  0x29   : > { %624 = vperm.xlu1 %1562, %v621_v2   ;;  %v1481_v2 = vld [vmem:[%s2034_s9 + $0x10] sm:$0xff]  ;;  %s1378_s5 = scalar_lea.sflag [#allocation3], %s591_s28  ;;  %p1583_p11 = scmp.ne.s32.totalorder %s1581_s1, %s1582_s6 }
  0x2a   : > { %p1587_p0 = scmp.lt.s32.totalorder %s1581_s1, %s2044_s19 }
  0x2b   : > { %655 = vrot.lane.b32.xlu0 %v612_v0, %s1631_s20  ;;  %p1584_p12 = pnand %p1583_p11, %p1775_p5 }
  0x2d   : > { %p1585_p13 = pneg %p1584_p12 }
  0x33   : > { %813 = vperm.xlu0 %1564, %v810_v26   ;;  %v1909_v26 = vsel %vm1024_vm6, 1.0, %v1633_v7 }
  0x95   : > { %v687_v9 = vpop.permute.xlu0 %686 }
  0x96   : > { %v688_v10 = vmul.f32 %v1458_v8, %v687_v9  ;;  %v967_v9 = vld [vmem:[%s2034_s9] sm:$0xff] }
  0x98   : > { %1466 = vmatpush.msk.msra.mxu2 %vm631_vm0, %v688_v10 }
  0x99   : > { %1467 = vmatmul.msk.f32.vlgmr.msra.gmra.mxu2 %vm627_vm1, %v1465_v11 }
  0x9a   : > { %1473 = vmatpush.msk.msrb.mxu2 %vm631_vm0, %v612_v0 }
  0x9b   : > { %v625_v16 = vpop.permute.xlu1 %624 }
  0x9d   : > { %v656_v13 = vpop.permute.xlu0 %655 }
  0x9e   : > { %v657_v14 = vmul.f32 %v1816_v12, %v656_v13  ;;  %v1484_v13 = vld [vmem:[%s2034_s9 + $0x8] sm:$0xff] }
  0xa0   : > { %1463 = vmatpush.msk.msra.mxu1 %vm631_vm0, %v657_v14 }
  0xa1   : > { %1464 = vmatmul.msk.f32.vlgmr.msra.gmra.mxu1 %vm627_vm1, %v658_v15  ;;  %v652_v17 = vpop.f32.mrf.mxu0  ;;  %1474 = vmatmul.msk.f32.vlgmr.msrb.gmra.mxu2 %vm627_vm1, %v809_v25  ;;  %v1488_v25 = vld [vmem:[%s2036_s11 + $0x28] sm:$0xff] }
  0xa2   : > { %v653_v18 = vadd.f32 %v652_v17, %v625_v16 }
  0xa5   : > { %v814_v38 = vpop.permute.xlu0 %813 }
 0x11c   : > { %v714_v20 = vpop.f32.mrf.mxu2 }
 0x11e   : > { %v682_v19 = vpop.f32.mrf.mxu1 }
 0x11f   : > { %v685_v21 = vadd.f32 %v682_v19, %v653_v18 }
 0x121   : > { %v717_v22 = vadd.f32 %v714_v20, %v685_v21 }
 0x123   : > { %v718_v23 = vmax.f32 %v717_v22, 0.0 }
 0x124   : > { %v836_v37 = vpop.f32.mrf.mxu2 }
 0x125   : > { %779 = vrot.lane.b32.xlu2 %v718_v23, %s1630_s25  ;;  %751 = vrot.lane.b32.xlu1 %v718_v23, %s1631_s20  ;;  %v837_v43 = vadd.f32 %v836_v37, %v814_v38 }
 0x126   : > { %746 = vmatpush.msra.mxu3 %v718_v23 }
 0x127   : > { %1469 = vmatmul.msk.f32.vlgmr.msra.gmra.mxu3 %vm727_vm4, %v1468_v24  ;;  %v1030_v24 = vld [vmem:[%s2037_s12] sm:$0xff] }
 0x12d   : > { %724 = vperm.xlu2 %1563, %v721_v27  }
 0x17f   : > { %v780_v28 = vpop.permute.xlu2 %779 }
 0x180   : > { %v781_v29 = vmul.f32 %v1458_v8, %v780_v28 }
 0x182   : > { %802 = vmatpush.msrb.mxu1 %v781_v29  ;;  %v1074_v29 = vld [vmem:[%s2036_s11] sm:$0xff] }
 0x183   : > { %1472 = vmatmul.msk.f32.vlgmr.msrb.gmra.mxu1 %vm727_vm4, %v1471_v30  ;;  %v1075_v30 = vld [vmem:[%s2036_s11 + $0x8] sm:$0xff] }
 0x187   : > { %v725_v34 = vpop.permute.xlu2 %724 }
 0x197   : > { %v752_v31 = vpop.permute.xlu1 %751 }
 0x198   : > { %v753_v32 = vmul.f32 %v1816_v12, %v752_v31  ;;  %v1493_v31 = vld [vmem:[%s2036_s11 + $0x10] sm:$0xff] }
 0x19a   : > { %773 = vmatpush.msrb.mxu0 %v753_v32  ;;  %v1494_v32 = vld [vmem:[%s2036_s11 + $0x18] sm:$0xff] }
 0x19b   : > { %1470 = vmatmul.msk.f32.vlgmr.msrb.gmra.mxu0 %vm727_vm4, %v754_v33  ;;  %v1272_v33 = vld [vmem:[%s2040_s15] sm:$0xff] }
 0x1aa   : > { %v748_v35 = vpop.f32.mrf.mxu3 }
 0x1ab   : > { %v749_v36 = vadd.f32 %v748_v35, %v725_v34  ;;  %v1273_v34 = vld [vmem:[%s2040_s15 + $0x8] sm:$0xff] }
 0x200   : > { %v804_v40 = vpop.f32.mrf.mxu1 }
 0x218   : > { %v775_v39 = vpop.f32.mrf.mxu0 }
 0x219   : > { %v778_v41 = vadd.f32 %v775_v39, %v749_v36 }
 0x21b   : > { %v807_v42 = vadd.f32 %v804_v40, %v778_v41 }
 0x21d   : > { %v808_v44 = vmax.f32 %v807_v42, 0.0 }
 0x21f   : > { %v839_v45 = vadd.f32 %v837_v43, %v808_v44 }
 0x221   : > { %v840_v46 = vmax.f32 %v839_v45, 0.0 }
 0x223   : > { %903 = vrot.lane.b32.xlu2 %v840_v46, %s1631_s20  ;;  %875 = vrot.lane.b32.xlu1 %v840_v46, %s1634_s2 }
 0x224   : > { %870 = vmatpush.msrb.mxu3 %v840_v46 }
 0x225   : > { %1477 = vmatmul.msk.f32.vlgmr.msrb.gmra.mxu3 %vm727_vm4, %v1476_v47 }
 0x22b   : > { %849 = vperm.xlu1 %1562, %v846_v48  }
 0x233   : > { %938 = vperm.xlu1 %1562, %v935_v49  }
 0x23b   : > { %1039 = vperm.xlu1 %1562, %v1031_v50  }
 0x27d   : > { %v904_v51 = vpop.permute.xlu2 %903 }
 0x27e   : > { %v905_v52 = vmul.f32 %v1816_v12, %v904_v51  ;;  %v1150_v51 = vld [vmem:[%s2039_s14 + $0x8] sm:$0xff] }
 0x280   : > { %926 = vmatpush.msra.mxu1 %v905_v52  ;;  %v1497_v52 = vld [vmem:[%s2038_s13 + $0x20] sm:$0xff] }
 0x281   : > { %1480 = vmatmul.msk.f32.vlgmr.msra.gmra.mxu1 %vm727_vm4, %v1479_v53  ;;  %v1149_v53 = vld [vmem:[%s2039_s14] sm:$0xff] }
 0x295   : > { %v876_v55 = vpop.permute.xlu1 %875 }
 0x296   : > { %v877_v56 = vmul.f32 %v1871_v54, %v876_v55  ;;  %v1274_v55 = vld [vmem:[%s2041_s16] sm:$0xff] }
 0x298   : > { %897 = vmatpush.msra.mxu0 %v877_v56  ;;  %v1498_v56 = vld [vmem:[%s2038_s13 + $0x28] sm:$0xff] }
 0x299   : > { %1478 = vmatmul.msk.f32.vlgmr.msra.gmra.mxu0 %vm727_vm4, %v878_v57  ;;  %v1275_v57 = vld [vmem:[%s2041_s16 + $0x8] sm:$0xff] }
 0x29d   : > { %v850_v59 = vpop.permute.xlu1 %849 }
 0x2a5   : > { %v939_v15 = vpop.permute.xlu1 %938 }
 0x2a8   : > { %v872_v58 = vpop.f32.mrf.mxu3 }
 0x2a9   : > { %v873_v60 = vadd.f32 %v872_v58, %v850_v59 }
 0x2ad   : > { %v1040_v44 = vpop.permute.xlu1 %1039 }
 0x2fe   : > { %v928_v62 = vpop.f32.mrf.mxu1 }
 0x316   : > { %v899_v61 = vpop.f32.mrf.mxu0 }
 0x317   : > { %v902_v63 = vadd.f32 %v899_v61, %v873_v60 }
 0x319   : > { %v931_v0 = vadd.f32 %v928_v62, %v902_v63 }
 0x31b   : > { %v932_v1 = vmax.f32 %v931_v0, 0.0  ;;  %v1503_v0 = vld [vmem:[%s2038_s13 + $0x10] sm:$0xff] }
 0x31d   : > { %992 = vrot.lane.b32.xlu0 %v932_v1, %s1631_s20  ;;  %964 = vrot.lane.b32.xlu2 %v932_v1, %s1634_s2  ;;  %s1456_s20 = sshll.u32 %s591_s28, 3 }
 0x31e   : > { %959 = vmatpush.msra.mxu2 %v932_v1 }
 0x31f   : > { %1482 = vmatmul.msk.f32.vlgmr.msra.gmra.mxu2 %vm727_vm4, %v1481_v2 }
 0x377   : > { %v965_v3 = vpop.permute.xlu2 %964 }
 0x378   : > { %v966_v8 = vmul.f32 %v1871_v54, %v965_v3  ;;  %v1197_v3 = vld [vmem:[%s2038_s13] sm:$0xff] }
 0x37a   : > { %986 = vmatpush.msra.mxu3 %v966_v8  ;;  %v1198_v8 = vld [vmem:[%s2038_s13 + $0x8] sm:$0xff] }
 0x37b   : > { %1483 = vmatmul.msk.f32.vlgmr.msra.gmra.mxu3 %vm727_vm4, %v967_v9 }
 0x38f   : > { %v993_v10 = vpop.permute.xlu0 %992 }
 0x390   : > { %v994_v11 = vmul.f32 %v1816_v12, %v993_v10  ;;  %v1487_v12 = vld [vmem:[%s2036_s11 + $0x20] sm:$0xff] }
 0x392   : > { %1015 = vmatpush.msrb.mxu0 %v994_v11 }
 0x393   : > { %1485 = vmatmul.msk.f32.vlgmr.msrb.gmra.mxu0 %vm727_vm4, %v1484_v13 }
 0x3a2   : > { %v961_v14 = vpop.f32.mrf.mxu2 }
 0x3a3   : > { %v962_v17 = vadd.f32 %v961_v14, %v939_v15 }
 0x3fe   : > { %v988_v16 = vpop.f32.mrf.mxu3 }
 0x3ff   : > { %v991_v18 = vadd.f32 %v988_v16, %v962_v17 }
 0x410   : > { %v1017_v19 = vpop.f32.mrf.mxu0 }
 0x411   : > { %v1020_v20 = vadd.f32 %v1017_v19, %v991_v18 }
 0x413   : > { %v1021_v21 = vmax.f32 %v1020_v20, 0.0 }
 0x415   : > { %v1022_v22 = vadd.f32 %v1021_v21, %v840_v46 }
 0x417   : > { %v1023_v23 = vmax.f32 %v1022_v22, 0.0 }
 0x419   : > { %1107 = vrot.lane.b32.xlu0 %v1023_v23, %s1634_s2  ;;  %1071 = vrot.lane.b32.xlu2 %v1023_v23, %s1635_s26 }
 0x41a   : > { %1063 = vmatpush.msrb.mxu1 %v1023_v23 }
 0x41b   : > { %1489 = vmatmul.msk.f32.vlgmr.msrb.gmra.mxu1 %vm727_vm4, %v1487_v12 }
 0x421   : > { %1034 = vperm.xlu2 %1563, %v1030_v24  }
 0x423   : > { %1490 = vmatmul.msk.f32.gmra.mxu1 %vm727_vm4, %v1488_v25 }
 0x473   : > { %v1072_v27 = vpop.permute.xlu2 %1071 }
 0x474   : > { %v1073_v28 = vmul.f32 %v1909_v26, %v1072_v27 }
 0x476   : > { %1097 = vmatpush.msrb.mxu2 %v1073_v28 }
 0x477   : > { %1491 = vmatmul.msk.f32.vlgmr.msrb.gmra.mxu2 %vm727_vm4, %v1074_v29 }
 0x47b   : > { %v1035_v37 = vpop.permute.xlu2 %1034 }
 0x47f   : > { %1492 = vmatmul.msk.f32.gmra.mxu2 %vm727_vm4, %v1075_v30 }
 0x48b   : > { %v1108_v6 = vpop.permute.xlu0 %1107 }
 0x48c   : > { %v1109_v7 = vmul.f32 %v1871_v54, %v1108_v6 }
 0x48e   : > { %1134 = vmatpush.msrb.mxu3 %v1109_v7 }
 0x48f   : > { %1495 = vmatmul.msk.f32.vlgmr.msrb.gmra.mxu3 %vm727_vm4, %v1493_v31 }
 0x490   : > { %1307 = vmatpush.msra.mxu3 %v1023_v23 }
 0x497   : > { %1496 = vmatmul.msk.f32.gmra.mxu3 %vm727_vm4, %v1494_v32 }
 0x498   : > { %v1065_v35 = vpop.f32.mrf.mxu1 }
 0x499   : > { %v1066_v38 = vadd.f32 %v1065_v35, %v1035_v37  ;;  %v1636_v37 = vmov 1.0  }
 0x49f   : > { %1507 = vmatmul.msk.f32.vlgmr.msra.gmra.mxu3 %vm727_vm4, %v1272_v33 }
 0x4a0   : > { %v1068_v42 = vpop.f32.mrf.mxu1 }
 0x4a1   : > { %v1069_v46 = vadd.f32 %v1068_v42, %v1040_v44 }
 0x4a7   : > { %1508 = vmatmul.msk.f32.gmra.mxu3 %vm727_vm4, %v1273_v34 }
 0x4fa   : > { %v1099_v36 = vpop.f32.mrf.mxu2 }
 0x4fb   : > { %v1105_v39 = vadd.f32 %v1099_v36, %v1066_v38  ;;  %v1347_v36 = vld [vmem:[%s2042_s17 + $0x8] sm:$0xff] }
 0x502   : > { %v1102_v45 = vpop.f32.mrf.mxu2 }
 0x503   : > { %v1106_v47 = vadd.f32 %v1102_v45, %v1069_v46 }
 0x512   : > { %v1136_v40 = vpop.f32.mrf.mxu3 }
 0x513   : > { %v1142_v41 = vadd.f32 %v1136_v40, %v1105_v39 }
 0x515   : > { %v1144_v43 = vmax.f32 %v1142_v41, 0.0 }
 0x517   : > { %1230 = vrot.lane.b32.xlu1 %v1144_v43, %s1634_s2 }
 0x51a   : > { %v1139_v48 = vpop.f32.mrf.mxu3 }
 0x51b   : > { %v1143_v49 = vadd.f32 %v1139_v48, %v1106_v47 }
 0x51d   : > { %v1145_v50 = vmax.f32 %v1143_v49, 0.0 }
 0x51f   : > { %1193 = vrot.lane.b32.xlu2 %v1145_v50, %s1635_s26  ;;  %1232 = vrot.lane.b32.xlu0 %v1145_v50, %s1634_s2 }
 0x520   : > { %1182 = vmatpush.msra.mxu0 %v1145_v50  ;;  %1158 = vperm.xlu1 %1562, %v1150_v51  }
 0x522   : > { %1183 = vmatpush.msra.mxu0 %v1144_v43  ;;  %v1309_v10 = vpop.f32.mrf.mxu3 }
 0x523   : > { %1499 = vmatmul.msk.f32.vlgmr.msra.gmra.mxu0 %vm1161_vm7, %v1497_v52 }
 0x527   : > { %1153 = vperm.xlu2 %1563, %v1149_v53   ;;  %1191 = vrot.lane.b32.xlu0 %v1144_v43, %s1635_s26  ;;  %s593_s26 = scalar_lea.vmem [#allocation2], %s1456_s20  ;;  %s1586_s20 = scalar_lea.hbm %s2044_s19, 16 }
 0x528   : > { %1278 = vperm.xlu1 %1562, %v1274_v55   ;;  %s1390_s29 = sshll.u32 %s593_s26, 4  ;;  %p1588_p1 = scmp.lt.s32.totalorder %s1586_s20, %s1582_s6  ;;  %s1391_s29 = int_to_ptr.vmem [resolvable:$true] %s1390_s29 }
 0x52a   : > { %v1312_v12 = vpop.f32.mrf.mxu3  ;;  %p1589_p2 = por %p1588_p1, %p1587_p0 }
 0x52b   : > { %1500 = vmatmul.msk.f32.gmra.mxu0 %vm1161_vm7, %v1498_v56 }
 0x52c   : > { %p1590_p3 = pnand %p1589_p2, %p1585_p13 }
 0x52f   : > { %1283 = vperm.xlu0 %1564, %v1275_v57  }
 0x579   : > { %v1194_v58 = vpop.permute.xlu2 %1193 }
 0x57a   : > { %v1196_v59 = vmul.f32 %v1909_v26, %v1194_v58 }
 0x57c   : > { %1219 = vmatpush.msra.mxu1 %v1196_v59 }
 0x581   : > { %v1154_v14 = vpop.permute.xlu2 %1153 }
 0x589   : > { %v1231_v60 = vpop.permute.xlu1 %1230 }
 0x58a   : > { %v1234_v63 = vmul.f32 %v1871_v54, %v1231_v60 }
 0x591   : > { %v1233_v61 = vpop.permute.xlu0 %1232 }
 0x592   : > { %v1235_v62 = vmul.f32 %v1871_v54, %v1233_v61  ;;  %v1504_v54 = vld [vmem:[%s2038_s13 + $0x18] sm:$0xff]  ;;  %v1159_v15 = vpop.permute.xlu1 %1158 }
 0x594   : > { %1259 = vmatpush.msra.mxu2 %v1235_v62 }
 0x596   : > { %1260 = vmatpush.msra.mxu2 %v1234_v63 }
 0x597   : > { %1505 = vmatmul.msk.f32.vlgmr.msra.gmra.mxu2 %vm1161_vm7, %v1503_v0 }
 0x599   : > { %v1192_v1 = vpop.permute.xlu0 %1191 }
 0x59a   : > { %v1195_v2 = vmul.f32 %v1909_v26, %v1192_v1  ;;  %v1320_v26 = vshrl.u32 %v598_v4, 7  ;;  %v1279_v27 = vpop.permute.xlu1 %1278  ;;  %v1346_v4 = vld [vmem:[%s2042_s17] sm:$0xff] }
 0x59b   : > { %v1310_v6 = vadd.f32 %v1309_v10, %v1279_v27 }
 0x59c   : > { %1220 = vmatpush.msra.mxu1 %v1195_v2  ;;  %v1321_v31 = vmul.u32 16, %v1320_v26 }
 0x59d   : > { %1501 = vmatmul.msk.f32.vlgmr.msra.gmra.mxu1 %vm1161_vm7, %v1197_v3 }
 0x59e   : > { %v1322_v34 = vadd.s32 15, %v1321_v31 }
 0x59f   : > { %1506 = vmatmul.msk.f32.gmra.mxu2 %vm1161_vm7, %v1504_v54 }
 0x5a0   : > { %v1185_v9 = vpop.f32.mrf.mxu0  ;;  %vm1323_vm8 = vcmp.eq.s32.totalorder %v1801_v5, %v1322_v34  ;;  %v1565_v5 = vld [vmem:[%s2043_s18] ss:$0 sm:$0xff] }
 0x5a1   : > { %v1186_v16 = vadd.f32 %v1185_v9, %v1154_v14  ;;  %v1284_v24 = vpop.permute.xlu0 %1283 }
 0x5a2   : > { %v1313_v28 = vadd.f32 %v1312_v12, %v1284_v24 }
 0x5a5   : > { %1502 = vmatmul.msk.f32.gmra.mxu1 %vm1161_vm7, %v1198_v8 }
 0x5a8   : > { %v1188_v17 = vpop.f32.mrf.mxu0 }
 0x5a9   : > { %v1189_v19 = vadd.f32 %v1188_v17, %v1159_v15 }
 0x61a   : > { %v1222_v11 = vpop.f32.mrf.mxu1  ;;  %v1262_v13 = vpop.f32.mrf.mxu2 }
 0x61b   : > { %v1228_v18 = vadd.f32 %v1222_v11, %v1186_v16 }
 0x61d   : > { %v1268_v22 = vadd.f32 %v1262_v13, %v1228_v18 }
 0x61f   : > { %v1270_v29 = vmax.f32 %v1268_v22, 0.0 }
 0x621   : > { %v1315_v32 = vadd.f32 %v1310_v6, %v1270_v29 }
 0x622   : > { %v1225_v20 = vpop.f32.mrf.mxu1  ;;  %v1265_v21 = vpop.f32.mrf.mxu2 }
 0x623   : > { %v1229_v23 = vadd.f32 %v1225_v20, %v1189_v19  ;;  %v1317_v35 = vmax.f32 %v1315_v32, 0.0 }
 0x625   : > { %v1269_v25 = vadd.f32 %v1265_v21, %v1229_v23 }
 0x627   : > { %v1271_v30 = vmax.f32 %v1269_v25, 0.0 }
 0x629   : > { %v1316_v7 = vadd.f32 %v1313_v28, %v1271_v30 }
 0x62b   : > { %v1318_v33 = vmax.f32 %v1316_v7, 0.0 }
 0x62d   : > { %1340 = vmatpush.xpose.msrb.mxu0 %v1318_v33 }
 0x631   : > { %1341 = vmatpush.xpose.msrb.mxu0 %v1317_v35 }
 0x634   : > { %1510 = vmatmul.msk.f32.vlgmr.msrb.gmra.mxu0 %vm1323_vm8, %v1636_v37 }
 0x635   : > { %1369 = vmatpush.msra.mxu0 %v1347_v36 }
 0x637   : > { %1370 = vmatpush.msra.mxu0 %v1346_v4 }
 0x6b1   : > { %v1343_v38 = vpop.f32.mrf.mxu0 }
 0x6b2   : > { %1511 = vmatmul.msk.f32.vlgmr.msra.gmra.mxu0 %vm1161_vm7, %v1343_v38 }
 0x72f   : > { %v1372_v39 = vpop.f32.mrf.mxu0 }
 0x730   : > { %v1373_v40 = vadd.f32 %v1565_v5, %v1372_v39 }
 0x732   : > { %1376 = vst.msk [vmem:[%s593_s26] sm:$0xff] %vm1375_vm9, %v1373_v40 }
 0x733   : > { %1593 = shalt.err (!%p1590_p3)
}
 0x734   : > { %1516 = dma.vmem_to_hbm [thread:$0]  (%p1775_p5), %s1391_s29, 128, %s1393_s4, %s1378_s5  }
 0x735 PF: > { %s2079_s28 = sld [smem:[#allocation5_spill]]  ;;  %p1522_p4 = scmp.ge.s32.totalorder %s1628_s21, 2 }
 0x737   : > { %p1519_p7 = pnand %p1522_p4, %p1779_p6 }
 0x739   : > { %p1520_p8 = pneg %p1519_p7 }
 0x73b   : > { %s1404_s24 = sand.u32 1, %s2079_s28  }
 0x73c   : > { %s1405_s26 = scalar_lea.sflag [#allocation3], %s1404_s24 }
 0x73d   : > { %1611 = dma.done.wait (%p1520_p8), %s1405_s26, 128  }
 0x73e   : > { %1613 = vsyncadd (%p1520_p8), %s1405_s26, 4294967168  ;;  %s2081_s21 = sld [smem:[#allocation7_spill]]  ;;  %s2084_s0 = smov %s1620_s30 }
 0x73f   : > { %s2082_s6 = sld [smem:[#allocation6_spill]] }
 0x740   : > { %s2083_s20 = sld [smem:[#allocation8_spill]] }
 0x744   : > { %p29_p9 = scmp.ge.s32.totalorder %s2081_s21, 4  }
 0x745   : > { %s2085_s30 = smov %s2082_s6 }
 0x746   :  { %31 = sbr.rel (!%p29_p9) target bundleno = 11 (0xb), region = 143 }
 0x74b   :  { %1411 = vsyncpa [#allocation3], 1 }
 0x74c   :  { %1413 = vsyncpa [#allocation3 + $0x1], 1 }

</bundles_post_ra>
